<compile_context>
chip_gen: v7x
topology: tpu7x:2x2x1
jax: 0.10.0
libtpu: 0.0.40
codegen_flags: <defaults>
</compile_context>

<pallas_src>
import functools

import jax
import jax.numpy as jnp
from jax.experimental import pallas as pl
from jax.experimental.pallas import tpu as pltpu


def _round_up(n, m):
    return ((n + m - 1) // m) * m


def _mlp_kernel(dropout_p, training,
                x_ref, rand_ref, w1_ref, b1_ref, w2_ref, b2_ref, w3_ref, b3_ref,
                o_ref):
    # Layer 1: (TB, IN) @ (IN, 256) on the MXU, f32 accumulation, f32 bias + ReLU.
    h1 = jnp.dot(x_ref[...], w1_ref[...], preferred_element_type=jnp.float32)
    h1 = jnp.maximum(h1 + b1_ref[...], 0.0)

    # Layer 2: cast activations to the weight dtype (bf16) for the native MXU path.
    h2 = jnp.dot(h1.astype(w2_ref.dtype), w2_ref[...],
                 preferred_element_type=jnp.float32)
    h2 = jnp.maximum(h2 + b2_ref[...], 0.0)

    # Layer 3 (out_features == 1): VPU multiply + lane reduction instead of a
    # 1-column matmul.  w3 is passed pre-transposed as a (1, 128) row.
    out = jnp.sum(h2 * w3_ref[...], axis=-1, keepdims=True) + b3_ref[...]

    if training and dropout_p > 0.0:
        if dropout_p >= 1.0:
            out = jnp.zeros_like(out)
        else:
            keep = rand_ref[...] >= dropout_p                   # P(keep) = 1 - p
            out = jnp.where(keep, out * (1.0 / (1.0 - dropout_p)), 0.0)

    o_ref[...] = out.astype(o_ref.dtype)


def regularized_mlp_forward(x, params, dropout_key=None, *, dropout_p=0.5,
                            training=True, block_batch=512, use_bf16=True):
    """Full RegularizedMLP forward (3 layers + dropout) in one Pallas call.

    x:           (B, input_size) float32
    params:      dict with w1 (in,256), b1 (1,256), w2 (256,128), b2 (1,128),
                 w3 (128,1), b3 (1,1)   (weights stored in x @ W layout)
    dropout_key: jax PRNG key (required when training and dropout_p > 0)
    returns      (B, 1) float32
    """
    B, in_features = x.shape

    # Batch tile: multiple of 8 sublanes, capped by block_batch; pad B up to a tile multiple.
    TB = min(block_batch, _round_up(B, 8))
    TB = max(8, (TB // 8) * 8)
    B_pad = _round_up(B, TB)
    n_tiles = B_pad // TB

    mm_dtype = jnp.bfloat16 if use_bf16 else jnp.float32
    x_p = x.astype(mm_dtype)
    if B_pad != B:
        x_p = jnp.pad(x_p, ((0, B_pad - B), (0, 0)))

    if training and dropout_p > 0.0:
        if dropout_key is None:
            raise ValueError("dropout_key is required in training mode with dropout_p > 0")
        rand = jax.random.uniform(dropout_key, (B_pad, 1), jnp.float32)
    else:
        rand = jnp.zeros((B_pad, 1), jnp.float32)

    w1 = params["w1"].astype(mm_dtype)
    w2 = params["w2"].astype(mm_dtype)
    w3_row = params["w3"].reshape(1, -1).astype(jnp.float32)    # (1, 128) lane-dense row
    b1, b2, b3 = params["b1"], params["b2"], params["b3"]

    tiled = lambda shape: pl.BlockSpec(shape, lambda i: (i, 0))
    resident = lambda shape: pl.BlockSpec(shape, lambda i: (0, 0))

    # Rough VMEM budget: double-buffered streamed arrays + resident weights + f32 intermediates.
    itemsize = jnp.dtype(mm_dtype).itemsize
    vmem_bytes = (2 * TB * in_features * itemsize               # x (double-buffered)
                  + 2 * TB * 4 * 2                              # rand + out (double-buffered)
                  + (in_features * 256 + 256 * 128) * itemsize  # w1, w2
                  + (256 + 128 + 1 + 128) * 4                   # biases + w3 row
                  + TB * (256 + 128 + 1) * 4)                   # h1 / h2 / out (f32)
    vmem_limit = int(min(max(2 * vmem_bytes, 16 * 1024 * 1024), 64 * 1024 * 1024))

    kernel = functools.partial(_mlp_kernel, float(dropout_p), bool(training))

    out = pl.pallas_call(
        kernel,
        out_shape=jax.ShapeDtypeStruct((B_pad, 1), jnp.float32),
        grid=(n_tiles,),
        in_specs=[
            tiled((TB, in_features)),        # x            (streamed per tile)
            tiled((TB, 1)),                  # dropout rand (streamed per tile)
            resident((in_features, 256)),    # w1           (VMEM-resident)
            resident((1, 256)),              # b1
            resident((256, 128)),            # w2
            resident((1, 128)),              # b2
            resident((1, 128)),              # w3 row
            resident((1, 1)),                # b3
        ],
        out_specs=tiled((TB, 1)),
        compiler_params=pltpu.CompilerParams(
            dimension_semantics=("parallel",),
            vmem_limit_bytes=vmem_limit),
    )(x_p, rand, w1, b1, w2, b2, w3_row, b3)

    return out[:B]


def init_params(key, input_size):
    """Deterministic init mimicking nn.Linear default (U[-1/sqrt(fan_in), 1/sqrt(fan_in)])."""
    def linear(key, fan_in, fan_out):
        kw, kb = jax.random.split(key)
        bound = 1.0 / jnp.sqrt(float(fan_in))
        w = jax.random.uniform(kw, (fan_in, fan_out), jnp.float32, -bound, bound)
        b = jax.random.uniform(kb, (1, fan_out), jnp.float32, -bound, bound)
        return w, b

    k1, k2, k3 = jax.random.split(key, 3)
    w1, b1 = linear(k1, input_size, 256)
    w2, b2 = linear(k2, 256, 128)
    w3, b3 = linear(k3, 128, 1)
    return {"w1": w1, "b1": b1, "w2": w2, "b2": b2, "w3": w3, "b3": b3}


if __name__ == "__main__":
    key = jax.random.PRNGKey(0)
    k_params, k_x, k_drop = jax.random.split(key, 3)

    batch, input_size = 8, 32
    x = jax.random.normal(k_x, (batch, input_size), jnp.float32)
    params = init_params(k_params, input_size)

    # Training-mode forward (matches the nn.Module default): dropout mask applied in-kernel.
    out_train = regularized_mlp_forward(x, params, dropout_key=k_drop,
                                        dropout_p=0.5, training=True)
    jax.block_until_ready(out_train)

    # Eval-mode forward (dropout = identity) -- deterministic; sanity-check vs JAX reference
    # computed with the same bf16-matmul / f32-accumulate precision path.
    out_eval = regularized_mlp_forward(x, params, dropout_p=0.5, training=False)
    jax.block_until_ready(out_eval)

    bf = jnp.bfloat16
    h1 = jnp.maximum(jnp.dot(x.astype(bf), params["w1"].astype(bf),
                             preferred_element_type=jnp.float32) + params["b1"], 0.0)
    h2 = jnp.maximum(jnp.dot(h1.astype(bf), params["w2"].astype(bf),
                             preferred_element_type=jnp.float32) + params["b2"], 0.0)
    ref = jnp.sum(h2 * params["w3"].reshape(1, -1), axis=-1, keepdims=True) + params["b3"]

    assert out_eval.shape == (batch, 1)
    assert jnp.allclose(out_eval, ref, atol=1e-3, rtol=1e-3), (
        f"max abs err {float(jnp.max(jnp.abs(out_eval - ref)))}")
    # Each training-mode element is either dropped (0) or the eval value scaled by 1/(1-p)=2.
    assert bool(jnp.all((out_train == 0.0)
                        | (jnp.abs(out_train - 2.0 * out_eval) <= 1e-5)))

    print("KERNEL_OK")
</pallas_src>

<mosaic_0001>
module attributes {stable_mosaic.version = 11 : i64} {
  func.func @_mlp_kernel(%arg0: i32, %arg1: memref<8x32xbf16, #tpu.memory_space<vmem>>, %arg2: memref<8x1xf32, #tpu.memory_space<vmem>>, %arg3: memref<32x256xbf16, #tpu.memory_space<vmem>>, %arg4: memref<1x256xf32, #tpu.memory_space<vmem>>, %arg5: memref<256x128xbf16, #tpu.memory_space<vmem>>, %arg6: memref<1x128xf32, #tpu.memory_space<vmem>>, %arg7: memref<1x128xf32, #tpu.memory_space<vmem>>, %arg8: memref<1x1xf32, #tpu.memory_space<vmem>>, %arg9: memref<8x1xf32, #tpu.memory_space<vmem>>) attributes {dimension_semantics = [#tpu.dimension_semantics<parallel>], iteration_bounds = array<i64: 1>, scalar_prefetch = 0 : i64, scratch_operands = 0 : i64, tpu.core_type = #tpu.core_type<tc>, window_params = [{transform_indices = @transform_0, window_bounds = array<i64: 8, 32>}, {transform_indices = @transform_1, window_bounds = array<i64: 8, 1>}, {pipeline_mode = #tpu.pipeline_mode<synchronous>, transform_indices = @transform_2, window_bounds = array<i64: 32, 256>}, {pipeline_mode = #tpu.pipeline_mode<synchronous>, transform_indices = @transform_3, window_bounds = array<i64: 1, 256>}, {pipeline_mode = #tpu.pipeline_mode<synchronous>, transform_indices = @transform_4, window_bounds = array<i64: 256, 128>}, {pipeline_mode = #tpu.pipeline_mode<synchronous>, transform_indices = @transform_5, window_bounds = array<i64: 1, 128>}, {pipeline_mode = #tpu.pipeline_mode<synchronous>, transform_indices = @transform_6, window_bounds = array<i64: 1, 128>}, {pipeline_mode = #tpu.pipeline_mode<synchronous>, transform_indices = @transform_7, window_bounds = array<i64: 1, 1>}, {transform_indices = @transform_8, window_bounds = array<i64: 8, 1>}]} {
    %c0 = arith.constant 0 : index
    %c0_0 = arith.constant 0 : index
    %0 = vector.load %arg1[%c0, %c0_0] : memref<8x32xbf16, #tpu.memory_space<vmem>>, vector<8x32xbf16>
    %c0_1 = arith.constant 0 : index
    %c0_2 = arith.constant 0 : index
    %1 = vector.load %arg3[%c0_1, %c0_2] : memref<32x256xbf16, #tpu.memory_space<vmem>>, vector<32x256xbf16>
    %cst = arith.constant dense<0.000000e+00> : vector<8x256xf32>
    %2 = tpu.matmul %0, %1, %cst {dimension_numbers = #tpu.dot_dimension_numbers<[1], [0], [0], [1], [0, 0, 1, 1], [], []>} : vector<8x32xbf16>, vector<32x256xbf16>, vector<8x256xf32> -> vector<8x256xf32>
    %c0_3 = arith.constant 0 : index
    %c0_4 = arith.constant 0 : index
    %3 = vector.load %arg4[%c0_3, %c0_4] : memref<1x256xf32, #tpu.memory_space<vmem>>, vector<1x256xf32>
    %4 = vector.broadcast %3 : vector<1x256xf32> to vector<8x256xf32>
    %5 = arith.addf %2, %4 : vector<8x256xf32>
    %cst_5 = arith.constant 0.000000e+00 : f32
    %6 = vector.broadcast %cst_5 : f32 to vector<8x256xf32>
    %7 = arith.maximumf %5, %6 : vector<8x256xf32>
    %8 = arith.truncf %7 : vector<8x256xf32> to vector<8x256xbf16>
    %c0_6 = arith.constant 0 : index
    %c0_7 = arith.constant 0 : index
    %9 = vector.load %arg5[%c0_6, %c0_7] : memref<256x128xbf16, #tpu.memory_space<vmem>>, vector<256x128xbf16>
    %cst_8 = arith.constant dense<0.000000e+00> : vector<8x128xf32>
    %10 = tpu.matmul %8, %9, %cst_8 {dimension_numbers = #tpu.dot_dimension_numbers<[1], [0], [0], [1], [0, 0, 1, 1], [], []>} : vector<8x256xbf16>, vector<256x128xbf16>, vector<8x128xf32> -> vector<8x128xf32>
    %c0_9 = arith.constant 0 : index
    %c0_10 = arith.constant 0 : index
    %11 = vector.load %arg6[%c0_9, %c0_10] : memref<1x128xf32, #tpu.memory_space<vmem>>, vector<1x128xf32>
    %12 = vector.broadcast %11 : vector<1x128xf32> to vector<8x128xf32>
    %13 = arith.addf %10, %12 : vector<8x128xf32>
    %cst_11 = arith.constant 0.000000e+00 : f32
    %14 = vector.broadcast %cst_11 : f32 to vector<8x128xf32>
    %15 = arith.maximumf %13, %14 : vector<8x128xf32>
    %c0_12 = arith.constant 0 : index
    %c0_13 = arith.constant 0 : index
    %16 = vector.load %arg7[%c0_12, %c0_13] : memref<1x128xf32, #tpu.memory_space<vmem>>, vector<1x128xf32>
    %17 = vector.broadcast %16 : vector<1x128xf32> to vector<8x128xf32>
    %18 = arith.mulf %15, %17 : vector<8x128xf32>
    %cst_14 = arith.constant dense<0.000000e+00> : vector<8xf32>
    %19 = vector.multi_reduction <add>, %18, %cst_14 [1] : vector<8x128xf32> to vector<8xf32>
    %20 = vector.shape_cast %19 : vector<8xf32> to vector<8x1xf32>
    %c0_15 = arith.constant 0 : index
    %c0_16 = arith.constant 0 : index
    %21 = vector.load %arg8[%c0_15, %c0_16] : memref<1x1xf32, #tpu.memory_space<vmem>>, vector<1x1xf32>
    %22 = vector.broadcast %21 : vector<1x1xf32> to vector<8x1xf32>
    %23 = arith.addf %20, %22 : vector<8x1xf32>
    %c0_17 = arith.constant 0 : index
    %c0_18 = arith.constant 0 : index
    %24 = vector.load %arg2[%c0_17, %c0_18] : memref<8x1xf32, #tpu.memory_space<vmem>>, vector<8x1xf32>
    %cst_19 = arith.constant 5.000000e-01 : f32
    %25 = vector.broadcast %cst_19 : f32 to vector<8x1xf32>
    %26 = arith.cmpf oge, %24, %25 : vector<8x1xf32>
    %cst_20 = arith.constant 2.000000e+00 : f32
    %27 = vector.broadcast %cst_20 : f32 to vector<8x1xf32>
    %28 = arith.mulf %23, %27 : vector<8x1xf32>
    %cst_21 = arith.constant 0.000000e+00 : f32
    %29 = vector.broadcast %cst_21 : f32 to vector<8x1xf32>
    %30 = arith.select %26, %28, %29 : vector<8x1xi1>, vector<8x1xf32>
    %c0_22 = arith.constant 0 : index
    %c0_23 = arith.constant 0 : index
    %31 = vector.load %arg9[%c0_22, %c0_23] : memref<8x1xf32, #tpu.memory_space<vmem>>, vector<8x1xf32>
    tpu.vector_store %arg9[%c0_22, %c0_23], %30 {strides = array<i32>} : memref<8x1xf32, #tpu.memory_space<vmem>>, vector<8x1xf32>,
    return
  }
  func.func @transform_0(%arg0: i32) -> (i32, i32) {
    %c0_i32 = arith.constant 0 : i32
    %c0_i32_0 = arith.constant 0 : i32
    return %arg0, %c0_i32 : i32, i32
  }
  func.func @transform_1(%arg0: i32) -> (i32, i32) {
    %c0_i32 = arith.constant 0 : i32
    %c0_i32_0 = arith.constant 0 : i32
    return %arg0, %c0_i32 : i32, i32
  }
  func.func @transform_2(%arg0: i32) -> (i32, i32) {
    %c0_i32 = arith.constant 0 : i32
    %c0_i32_0 = arith.constant 0 : i32
    %c0_i32_1 = arith.constant 0 : i32
    return %c0_i32, %c0_i32_0 : i32, i32
  }
  func.func @transform_3(%arg0: i32) -> (i32, i32) {
    %c0_i32 = arith.constant 0 : i32
    %c0_i32_0 = arith.constant 0 : i32
    %c0_i32_1 = arith.constant 0 : i32
    return %c0_i32, %c0_i32_0 : i32, i32
  }
  func.func @transform_4(%arg0: i32) -> (i32, i32) {
    %c0_i32 = arith.constant 0 : i32
    %c0_i32_0 = arith.constant 0 : i32
    %c0_i32_1 = arith.constant 0 : i32
    return %c0_i32, %c0_i32_0 : i32, i32
  }
  func.func @transform_5(%arg0: i32) -> (i32, i32) {
    %c0_i32 = arith.constant 0 : i32
    %c0_i32_0 = arith.constant 0 : i32
    %c0_i32_1 = arith.constant 0 : i32
    return %c0_i32, %c0_i32_0 : i32, i32
  }
  func.func @transform_6(%arg0: i32) -> (i32, i32) {
    %c0_i32 = arith.constant 0 : i32
    %c0_i32_0 = arith.constant 0 : i32
    %c0_i32_1 = arith.constant 0 : i32
    return %c0_i32, %c0_i32_0 : i32, i32
  }
  func.func @transform_7(%arg0: i32) -> (i32, i32) {
    %c0_i32 = arith.constant 0 : i32
    %c0_i32_0 = arith.constant 0 : i32
    %c0_i32_1 = arith.constant 0 : i32
    return %c0_i32, %c0_i32_0 : i32, i32
  }
  func.func @transform_8(%arg0: i32) -> (i32, i32) {
    %c0_i32 = arith.constant 0 : i32
    %c0_i32_0 = arith.constant 0 : i32
    return %arg0, %c0_i32 : i32, i32
  }
}

</mosaic_0001>

<bundles_post_ra>
// kernel: tpu_custom_call.1
= control target key start
LH: loop header
LB: loop body
LE: loop exit
PB: predicated region body
PF: predicated region fallthrough
CT: control target
= control target key end

     0   :  { %s572_s0 = inlined_call_operand.vmem [shape: bf16[8,32], index: 0, kind: input, shape index: {}]   ;;  %s573_s1 = inlined_call_operand.vmem [shape: f32[8,1], index: 1, kind: input, shape index: {}]   ;;  %s574_s2 = inlined_call_operand.hbm [shape: bf16[32,256], index: 2, kind: input, shape index: {}]   ;;  %s575_s3 = inlined_call_operand.vmem [shape: f32[1,256], index: 3, kind: input, shape index: {}]   ;;  %s576_s4 = inlined_call_operand.hbm [shape: bf16[256,128], index: 4, kind: input, shape index: {}]   ;;  %s577_s5 = inlined_call_operand.vmem [shape: f32[1,128], index: 5, kind: input, shape index: {}]   ;;  %s578_s6 = inlined_call_operand.vmem [shape: f32[1,128], index: 6, kind: input, shape index: {}]   ;;  %s579_s7 = inlined_call_operand.<no memory space> [shape: f32[1,1], index: 7, kind: input, shape index: {}]   ;;  %s580_s8 = inlined_call_operand.vmem [shape: f32[8,1], index: 8, kind: output, shape index: {}]  }
   0x1   :  { %v13_v0 = vstv %s579_s7 }
   0x2   :  { %14 = vst [vmem:[#allocation2] sm:$0x1] %v13_v0 }
   0x3   :  { %15 = vsyncpa [#allocation4], 0 }
   0x4   :  { %16 = vsyncpa [#allocation6], 0  ;;  %s475_s29 = smov [#allocation3]   ;;  %s427_s11 = scalar_lea.hbm %s574_s2, 512 }
   0x5   :  { %s26_s30 = sshll.u32 %s475_s29, 4  ;;  %p428_p0 = scmp.ne.s32.totalorder %s574_s2, %s427_s11  ;;  %s27_s30 = int_to_ptr.vmem [resolvable:$true] %s26_s30 }
   0x6   :  { %p431_p1 = scmp.lt.u32.totalorder %s427_s11, %s574_s2 }
   0x8   :  { %p433_p2 = pnand %p431_p1, %p428_p0 }
   0xa   :  { %436 = shalt.err (!%p433_p2)
}
   0xb   :  { %s437_s7 = scalar_lea.vmem %s27_s30, 512  ;;  %p442_p4 = scmp.lt.s32.totalorder %s27_s30, %s27_s30 }
   0xc   :  { %p438_p3 = scmp.ne.s32.totalorder %s27_s30, %s437_s7  ;;  %p443_p5 = scmp.lt.s32.totalorder %s437_s7, %s437_s7 }
   0xe   :  { %p444_p6 = por %p443_p5, %p442_p4 }
  0x10   :  { %p445_p7 = pnand %p444_p6, %p438_p3 }
  0x12   :  { %448 = shalt.err (!%p445_p7)
}
  0x13   :  { %s476_s16 = smov 128   ;;  %s477_s17 = smov 8  }
  0x14   :  { %32 = dma.hbm_to_vmem [thread:$0]  %s574_s2, 512, %s27_s30, [#allocation4], %s476_s16, %s476_s16, %s477_s17  }
  0x15   :  { %s478_s20 = smov [#allocation5]   ;;  %s449_s24 = scalar_lea.hbm %s576_s4, 2048 }
  0x16   :  { %s40_s21 = sshll.u32 %s478_s20, 4  ;;  %p450_p8 = scmp.ne.s32.totalorder %s576_s4, %s449_s24  ;;  %s41_s21 = int_to_ptr.vmem [resolvable:$true] %s40_s21 }
  0x17   :  { %p453_p9 = scmp.lt.u32.totalorder %s449_s24, %s576_s4 }
  0x19   :  { %p455_p10 = pnand %p453_p9, %p450_p8 }
  0x1b   :  { %458 = shalt.err (!%p455_p10)
}
  0x1c   :  { %s459_s29 = scalar_lea.vmem %s41_s21, 2048  ;;  %p464_p12 = scmp.lt.s32.totalorder %s41_s21, %s41_s21 }
  0x1d   :  { %p460_p11 = scmp.ne.s32.totalorder %s41_s21, %s459_s29  ;;  %p465_p13 = scmp.lt.s32.totalorder %s459_s29, %s459_s29 }
  0x1f   :  { %p466_p0 = por %p465_p13, %p464_p12 }
  0x21   :  { %p467_p1 = pnand %p466_p0, %p460_p11 }
  0x23   :  { %470 = shalt.err (!%p467_p1)
}
  0x24   :  { %s479_s2 = smov 64   ;;  %s480_s30 = smov 4  }
  0x25   :  { %46 = dma.hbm_to_vmem [thread:$0]  %s576_s4, 2048, %s41_s21, [#allocation6], %s479_s2, %s479_s2, %s480_s30  }
  0x26   :  { %471 = dma.done.wait [#allocation4], 512  }
  0x27   :  { %472 = vsyncadd [#allocation4], 4294966784 }
  0x28   :  { %473 = dma.done.wait [#allocation6], 2048  }
  0x29   :  { %474 = vsyncadd [#allocation6], 4294965248  ;;  %v481_v1 = vmov 0   ;;  %v405_v2 = vld [vmem:[#allocation3 + $0x4] ss:$8 sps:$4 sm:$0xff]   ;;  %vm97_vm0 = vcmask 261120   ;;  %v67_v23 = vlaneseq }
  0x2a   :  { %133 = vmatprep.mubr.bf16.mxu0 %v481_v1  ;;  %v407_v3 = vld [vmem:[#allocation3] ss:$8 sps:$4 sm:$0xff]   ;;  %101 = vmatprep.subr.bf16.mxu0 %v405_v2  ;;  %v408_v4 = vld [vmem:[#allocation3 + $0x14] ss:$8 sps:$4 sm:$0xff]   ;;  %v410_v5 = vld [vmem:[#allocation3 + $0x10] ss:$8 sps:$4 sm:$0xff]  }
  0x2b   :  { %102 = vmatpush1.bf16.msra.mxu0 %v407_v3  ;;  %v411_v6 = vld [vmem:[#allocation5 + $0x40] sm:$0xff]   ;;  %v413_v9 = vld [vmem:[#allocation5 + $0x48] sm:$0xff]   ;;  %v415_v11 = vld [vmem:[#allocation5 + $0x50] sm:$0xff]   ;;  %v68_v24 = vshrl.u32 %v67_v23, 7  ;;  %vm344_vm2 = vcmask 7168  }
  0x2c   :  { %103 = vmatprep.subr.bf16.mxu0 %v408_v4  ;;  %v412_v7 = vld [vmem:[#allocation5] sm:$0xff]   ;;  %376 = vmatprep.subr.bf16.mxu1 %v411_v6  ;;  %v414_v10 = vld [vmem:[#allocation5 + $0x8] sm:$0xff]   ;;  %v416_v12 = vld [vmem:[#allocation5 + $0x10] sm:$0xff]  }
  0x2d   :  { %v60_v8 = vld [vmem:[%s572_s0] sm:$0xf]  ;;  %377 = vmatpush3.bf16.msra.mxu1 %v412_v7  ;;  %v421_v17 = vld [vmem:[#allocation5 + $0x68] sm:$0xff]   ;;  %v423_v19 = vld [vmem:[#allocation5 + $0x70] sm:$0xff]   ;;  %v69_v25 = vsub.s32 0, %v68_v24  ;;  %v73_v27 = vsub.s32 1, %v68_v24 }
  0x2e   :  { %378 = vmatprep.subr.bf16.mxu1 %v413_v9  ;;  %v417_v13 = vld [vmem:[#allocation5 + $0x58] sm:$0xff]   ;;  %v419_v15 = vld [vmem:[#allocation5 + $0x60] sm:$0xff]   ;;  %v422_v18 = vld [vmem:[#allocation5 + $0x28] sm:$0xff]  }
  0x2f   :  { %104 = vmatpush1.bf16.msra.mxu0 %v410_v5  ;;  %v418_v14 = vld [vmem:[#allocation5 + $0x18] sm:$0xff]   ;;  %v420_v16 = vld [vmem:[#allocation5 + $0x20] sm:$0xff]   ;;  %v424_v20 = vld [vmem:[#allocation5 + $0x30] sm:$0xff]  }
  0x30   :  { %v425_v21 = vld [vmem:[#allocation5 + $0x78] sm:$0xff]  }
  0x31   :  { %379 = vmatpush3.bf16.msra.mxu1 %v414_v10  ;;  %v426_v22 = vld [vmem:[#allocation5 + $0x38] sm:$0xff]  }
  0x32   :  { %356 = vmatmul.mubr.msk.bf16.vlgmr.msra.gmra.mrb[0].mxu0 %vm97_vm0, %v60_v8  ;;  %380 = vmatprep.subr.bf16.mxu1 %v415_v11  ;;  %v65_v26 = vld [vmem:[%s575_s3] sm:$0x3] }
  0x33   :  { %v70_v28 = vrot.slane %v65_v26, %v69_v25  ;;  %v74_v29 = vrot.slane %v65_v26, %v73_v27  ;;  %v357_v42 = vld [vmem:[%s577_s5] ss:$0 sm:$0xff] }
  0x34   :  { %v374_v47 = vld [vmem:[%s578_s6] ss:$0 sm:$0xff] }
  0x35   :  { %381 = vmatpush3.bf16.msra.mxu1 %v416_v12  ;;  %v375_v50 = vld [vmem:[#allocation2] ss:$0 sm:$0xff] }
  0x36   :  { %382 = vmatprep.subr.bf16.mxu1 %v417_v13  ;;  %v340_v51 = vld [vmem:[%s573_s1] sm:$0xff] }
  0x37   :  { %vm341_vm1 = vcmp.ge.f32.partialorder %v340_v51, 0.5 }
  0x39   :  { %383 = vmatpush3.bf16.msra.mxu1 %v418_v14 }
  0x3a   :  { %384 = vmatprep.subr.bf16.mxu1 %v419_v15 }
  0x3d   :  { %385 = vmatpush3.bf16.msra.mxu1 %v420_v16 }
  0x3e   :  { %386 = vmatprep.subr.bf16.mxu1 %v421_v17 }
  0x41   :  { %387 = vmatpush3.bf16.msra.mxu1 %v422_v18 }
  0x42   :  { %388 = vmatprep.subr.bf16.mxu1 %v423_v19 }
  0x45   :  { %389 = vmatpush3.bf16.msra.mxu1 %v424_v20 }
  0x46   :  { %390 = vmatprep.subr.bf16.mxu1 %v425_v21 }
  0x49   :  { %391 = vmatpush3.bf16.msra.mxu1 %v426_v22 }
 0x105   :  { %v135_v30 = vpop.f32.mrb[0].mxu0 }
 0x106   :  { %v136_v31 = vadd.f32 %v135_v30, %v70_v28  ;;  %v137_v32 = vpop.f32.mrb[1].mxu0 }
 0x107   :  { %v138_v33 = vadd.f32 %v137_v32, %v74_v29  ;;  %v139_v34 = vpop.f32.mrb[2].mxu0 }
 0x108   :  { %v142_v35 = vmax.f32 %v136_v31, 0.0  ;;  %v140_v36 = vpop.f32.mrb[3].mxu0 }
 0x109   :  { %v143_v37 = vmax.f32 %v138_v33, 0.0 }
 0x10a   :  { %v144_v39 = vpack.c.bf16 %v142_v35, %v142_v35 }
 0x10b   :  { %v145_v38 = vpack.c.bf16 %v143_v37, %v143_v37 }
 0x10d   :  { %313 = vmatprep.mubr.bf16.mxu1 %v145_v38 }
 0x10e   :  { %314 = vmatmul.mubr.bf16.vlgmr.msra.gmra.mrb[0].mxu1 %v144_v39 }
 0x1e1   :  { %v392_v40 = vpop.f32.mrb[0].mxu1 }
 0x1e2   :  { %v393_v41 = vpop.f32.mrb[1].mxu1 }
 0x1e3   :  { %v394_v43 = vadd.f32 %v393_v41, %v392_v40  ;;  %v395_v44 = vpop.f32.mrb[2].mxu1 }
 0x1e4   :  { %v396_v45 = vpop.f32.mrb[3].mxu1 }
 0x1e5   :  { %v316_v46 = vadd.f32 %v394_v43, %v357_v42 }
 0x1e7   :  { %v321_v48 = vmax.f32 %v316_v46, 0.0 }
 0x1e9   :  { %v329_v49 = vmul.f32 %v374_v47, %v321_v48 }
 0x1eb   :  { %330 = vadd.xlane.f32.xlu0 %v329_v49 }
 0x278   :  { %v331_v52 = vpop.xlane.xlu0 %330 }
 0x279   :  { %v339_v53 = vadd.f32 %v375_v50, %v331_v52 }
 0x27b   :  { %v342_v54 = vmul.f32 2.0, %v339_v53 }
 0x27d   :  { %v343_v55 = vsel %vm341_vm1, %v342_v54, 0.0 }
 0x27e   :  { %345 = vst.msk [vmem:[%s580_s8] sm:$0xff] %vm344_vm2, %v343_v55 }
 0x27f   :  { %350 = vsyncpa [#allocation4], 1 }
 0x280   :  { %351 = vsyncpa [#allocation6], 1 }

</bundles_post_ra>
